<compile_context>
chip_gen: v7x
topology: tpu7x:2x2x1
jax: 0.10.0
libtpu: 0.0.40
codegen_flags: <defaults>
</compile_context>

<pallas_src>
import jax
import jax.numpy as jnp
from jax.experimental import pallas as pl
from jax.experimental.pallas import tpu as pltpu


def _onnx_trt_kernel(x_ref, boxes_ref, scores_ref):
    # x_ref:      (5 + C, TN)  features on sublanes, boxes (N) on lanes.
    # boxes_ref:  (4, TN)      rows = x1, y1, x2, y2.
    # scores_ref: (C, TN)      per-class score * objectness.
    x = x_ref[...]
    conf = x[4:5, :]            # (1, TN) objectness
    cls = x[5:, :]              # (C, TN) class scores

    # Dominant lane-dense store first.
    # NOTE: a stride-0 sublane-broadcast load (pl.ds(4, C, stride=0)) could
    # replace the jnp broadcast of `conf`; plain broadcasting is kept for
    # lowering robustness — the kernel is DMA-bound either way.
    scores_ref[...] = cls * conf

    # Box cxcywh -> xyxy as two paired (2, TN) FMAs (convert_matrix folded
    # into +-0.5 immediates); two paired stores instead of four 1-sublane ones.
    xy = x[0:2, :]              # (2, TN): cx, cy
    half_wh = 0.5 * x[2:4, :]   # (2, TN): w/2, h/2
    boxes_ref[0:2, :] = xy - half_wh   # x1, y1
    boxes_ref[2:4, :] = xy + half_wh   # x2, y2


def _pick_tile_n(n):
    # Largest lane-dense N-tile up to 4096 (always a multiple of 128).
    # 4096 keeps the double-buffered VMEM footprint ~6 MB at D=85 (safe on
    # every TPU generation without raising the scoped-VMEM limit much); the
    # cdiv grid masks the ragged final block so no divisibility trap and no
    # jnp.pad.  (TN=8192 is a further option on v6e/v7x if VMEM is re-checked.)
    return min(4096, ((n + 127) // 128) * 128)


def onnx_trt_preprocess_lane_dense(x_t):
    """Pallas hot path, lane-dense end to end (no wrapper relayout).

    x_t: [B, 5+C, N]  (features on sublanes, boxes on lanes), any float dtype.
    Returns (boxes_t [B, 4, N], scores_t [B, C, N]) in x_t.dtype.
    """
    B, D, N = x_t.shape
    C = D - 5
    tn = _pick_tile_n(N)
    grid = (B, pl.cdiv(N, tn))          # ragged final block is edge-masked

    boxes_t, scores_t = pl.pallas_call(
        _onnx_trt_kernel,
        out_shape=(
            jax.ShapeDtypeStruct((B, 4, N), x_t.dtype),
            jax.ShapeDtypeStruct((B, C, N), x_t.dtype),
        ),
        grid_spec=pltpu.PrefetchScalarGridSpec(
            num_scalar_prefetch=0,
            grid=grid,
            in_specs=[
                pl.BlockSpec((None, D, tn), lambda b, n: (b, 0, n)),
            ],
            out_specs=(
                pl.BlockSpec((None, 4, tn), lambda b, n: (b, 0, n)),
                pl.BlockSpec((None, C, tn), lambda b, n: (b, 0, n)),
            ),
        ),
        compiler_params=pltpu.CompilerParams(
            dimension_semantics=("parallel", "parallel"),
            vmem_limit_bytes=32 * 1024 * 1024,
        ),
    )(x_t)
    return boxes_t, scores_t


def onnx_trt_preprocess(x):
    """Native-layout wrapper (PyTorch interface parity).

    x: [B, N, 5+C].  Returns (boxes [B, N, 4], scores [B, N, C]).
    The single input transpose is the producer-boundary cost of the PyTorch
    layout; a pipeline that keeps data lane-dense should call
    `onnx_trt_preprocess_lane_dense` directly and skip all relayouts.
    """
    x_t = jnp.transpose(x, (0, 2, 1))
    boxes_t, scores_t = onnx_trt_preprocess_lane_dense(x_t)
    return jnp.transpose(boxes_t, (0, 2, 1)), jnp.transpose(scores_t, (0, 2, 1))


class ONNX_TRT_Pallas:
    """JAX/Pallas port of yolov7 ONNX_TRT module."""

    def __init__(self, max_obj=100, iou_thres=0.45, score_thres=0.25,
                 max_wh=False):
        assert max_wh is False
        self.background_class = (-1,)
        self.box_coding = (0,)
        self.iou_threshold = iou_thres
        self.max_obj = max_obj
        self.plugin_version = "1"
        self.score_activation = 0
        self.score_threshold = score_thres
        # Kept for parity with the PyTorch __init__ / reference checks;
        # the kernel hard-codes these coefficients as immediates.
        self.convert_matrix = jnp.array(
            [[1.0, 0.0, 1.0, 0.0],
             [0.0, 1.0, 0.0, 1.0],
             [-0.5, 0.0, 0.5, 0.0],
             [0.0, -0.5, 0.0, 0.5]], dtype=jnp.float32)

    def __call__(self, x, key):
        B, N, D = x.shape
        num_classes = D - 5

        # --- Pallas hot path: score *= conf ; box cxcywh -> xyxy ---
        # Kept lane-dense (one boundary transpose exists only because this
        # entry point mirrors the PyTorch [B, N, 5+C] interface).
        boxes_t, scores_t = onnx_trt_preprocess_lane_dense(
            jnp.transpose(x, (0, 2, 1)))

        # --- TRT_NMS.apply stub ---
        # TODO(synk): EfficientNMS_TRT is a TensorRT plugin; the reference
        # PyTorch forward returns random tensors of these shapes/dtypes (it
        # only uses scores.shape), so we reproduce the stub semantics with
        # deterministic RNG.  Because the stub does not consume boxes/scores
        # values, the pallas_call is dead code under jit of __call__;
        # benchmark onnx_trt_preprocess_lane_dense directly for kernel timing.
        del boxes_t, scores_t
        k1, k2, k3, k4 = jax.random.split(key, 4)
        num_det = jax.random.randint(
            k1, (B, 1), 0, self.max_obj, dtype=jnp.int32)
        det_boxes = jax.random.normal(
            k2, (B, self.max_obj, 4), dtype=jnp.float32)
        det_scores = jax.random.normal(
            k3, (B, self.max_obj), dtype=jnp.float32)
        det_classes = jax.random.randint(
            k4, (B, self.max_obj), 0, num_classes, dtype=jnp.int32)
        return num_det, det_boxes, det_scores, det_classes


if __name__ == "__main__":
    key = jax.random.PRNGKey(0)
    k_in, k_in2, k_nms = jax.random.split(key, 3)

    module = ONNX_TRT_Pallas(max_obj=100, iou_thres=0.45, score_thres=0.25)
    cm = module.convert_matrix

    # --- Primary test: lane-aligned N, production (lane-dense) entry point ---
    B, N, C = 2, 2048, 16          # batch, num_boxes, num_classes
    D = 5 + C
    x = jax.random.normal(k_in, (B, N, D), dtype=jnp.float32)
    ref_boxes = x[:, :, :4] @ cm
    ref_scores = x[:, :, 5:] * x[:, :, 4:5]

    x_t = jnp.transpose(x, (0, 2, 1))                       # [B, D, N]
    boxes_t, scores_t = onnx_trt_preprocess_lane_dense(x_t)
    jax.block_until_ready((boxes_t, scores_t))
    assert boxes_t.shape == (B, 4, N) and scores_t.shape == (B, C, N)
    assert boxes_t.dtype == x.dtype and scores_t.dtype == x.dtype
    assert jnp.allclose(jnp.transpose(boxes_t, (0, 2, 1)), ref_boxes,
                        atol=1e-5, rtol=1e-5)
    assert jnp.allclose(jnp.transpose(scores_t, (0, 2, 1)), ref_scores,
                        atol=1e-5, rtol=1e-5)

    # --- Native-layout wrapper (PyTorch interface parity) ---
    boxes, scores = onnx_trt_preprocess(x)
    jax.block_until_ready((boxes, scores))
    assert boxes.shape == (B, N, 4) and scores.shape == (B, N, C)
    assert jnp.allclose(boxes, ref_boxes, atol=1e-5, rtol=1e-5)
    assert jnp.allclose(scores, ref_scores, atol=1e-5, rtol=1e-5)

    # --- Ragged-N test: exercises cdiv grid + edge-masked final block ---
    N2 = 300
    x2 = jax.random.normal(k_in2, (B, N2, D), dtype=jnp.float32)
    boxes2, scores2 = onnx_trt_preprocess(x2)
    jax.block_until_ready((boxes2, scores2))
    assert boxes2.shape == (B, N2, 4) and scores2.shape == (B, N2, C)
    assert jnp.allclose(boxes2, x2[:, :, :4] @ cm, atol=1e-5, rtol=1e-5)
    assert jnp.allclose(scores2, x2[:, :, 5:] * x2[:, :, 4:5],
                        atol=1e-5, rtol=1e-5)

    # --- Full module forward (Pallas preprocess + stub NMS outputs) ---
    num_det, det_boxes, det_scores, det_classes = module(x, k_nms)
    jax.block_until_ready((num_det, det_boxes, det_scores, det_classes))
    assert num_det.shape == (B, 1) and num_det.dtype == jnp.int32
    assert det_boxes.shape == (B, 100, 4) and det_boxes.dtype == jnp.float32
    assert det_scores.shape == (B, 100) and det_scores.dtype == jnp.float32
    assert det_classes.shape == (B, 100) and det_classes.dtype == jnp.int32

    print("KERNEL_OK")
</pallas_src>

<mosaic_0001>
module attributes {stable_mosaic.version = 11 : i64} {
  func.func @_onnx_trt_kernel(%arg0: i32, %arg1: i32, %arg2: memref<1x21x2048xf32, #tpu.memory_space<vmem>>, %arg3: memref<1x4x2048xf32, #tpu.memory_space<vmem>>, %arg4: memref<1x16x2048xf32, #tpu.memory_space<vmem>>) attributes {dimension_semantics = [#tpu.dimension_semantics<parallel>, #tpu.dimension_semantics<parallel>], iteration_bounds = array<i64: 2, 1>, scalar_prefetch = 0 : i64, scratch_operands = 0 : i64, tpu.core_type = #tpu.core_type<tc>, window_params = [{transform_indices = @transform_0, window_bounds = array<i64: 1, 21, 2048>}, {transform_indices = @transform_1, window_bounds = array<i64: 1, 4, 2048>}, {transform_indices = @transform_2, window_bounds = array<i64: 1, 16, 2048>}]} {
    %c0 = arith.constant 0 : index
    %c0_0 = arith.constant 0 : index
    %c0_1 = arith.constant 0 : index
    %0 = vector.load %arg2[%c0, %c0_0, %c0_1] : memref<1x21x2048xf32, #tpu.memory_space<vmem>>, vector<1x21x2048xf32>
    %1 = vector.shape_cast %0 : vector<1x21x2048xf32> to vector<21x2048xf32>
    %2 = vector.extract_strided_slice %1 {offsets = [4, 0], sizes = [1, 2048], strides = [1, 1]} : vector<21x2048xf32> to vector<1x2048xf32>
    %3 = vector.extract_strided_slice %1 {offsets = [5, 0], sizes = [16, 2048], strides = [1, 1]} : vector<21x2048xf32> to vector<16x2048xf32>
    %4 = vector.broadcast %2 : vector<1x2048xf32> to vector<16x2048xf32>
    %5 = arith.mulf %3, %4 : vector<16x2048xf32>
    %c0_2 = arith.constant 0 : index
    %c0_3 = arith.constant 0 : index
    %c0_4 = arith.constant 0 : index
    %6 = vector.load %arg4[%c0_2, %c0_3, %c0_4] : memref<1x16x2048xf32, #tpu.memory_space<vmem>>, vector<1x16x2048xf32>
    %7 = vector.shape_cast %6 : vector<1x16x2048xf32> to vector<16x2048xf32>
    %8 = vector.shape_cast %5 : vector<16x2048xf32> to vector<1x16x2048xf32>
    tpu.vector_store %arg4[%c0_2, %c0_3, %c0_4], %8 {strides = array<i32>} : memref<1x16x2048xf32, #tpu.memory_space<vmem>>, vector<1x16x2048xf32>,
    %9 = vector.extract_strided_slice %1 {offsets = [0, 0], sizes = [2, 2048], strides = [1, 1]} : vector<21x2048xf32> to vector<2x2048xf32>
    %10 = vector.extract_strided_slice %1 {offsets = [2, 0], sizes = [2, 2048], strides = [1, 1]} : vector<21x2048xf32> to vector<2x2048xf32>
    %cst = arith.constant 5.000000e-01 : f32
    %11 = vector.broadcast %cst : f32 to vector<2x2048xf32>
    %12 = arith.mulf %11, %10 : vector<2x2048xf32>
    %13 = arith.subf %9, %12 : vector<2x2048xf32>
    %c0_5 = arith.constant 0 : index
    %c0_6 = arith.constant 0 : index
    %c0_7 = arith.constant 0 : index
    %14 = vector.load %arg3[%c0_5, %c0_6, %c0_7] : memref<1x4x2048xf32, #tpu.memory_space<vmem>>, vector<1x2x2048xf32>
    %15 = vector.shape_cast %14 : vector<1x2x2048xf32> to vector<2x2048xf32>
    %16 = vector.shape_cast %13 : vector<2x2048xf32> to vector<1x2x2048xf32>
    tpu.vector_store %arg3[%c0_5, %c0_6, %c0_7], %16 {strides = array<i32>} : memref<1x4x2048xf32, #tpu.memory_space<vmem>>, vector<1x2x2048xf32>,
    %17 = arith.addf %9, %12 : vector<2x2048xf32>
    %c0_8 = arith.constant 0 : index
    %c2 = arith.constant 2 : index
    %c0_9 = arith.constant 0 : index
    %18 = vector.load %arg3[%c0_8, %c2, %c0_9] : memref<1x4x2048xf32, #tpu.memory_space<vmem>>, vector<1x2x2048xf32>
    %19 = vector.shape_cast %18 : vector<1x2x2048xf32> to vector<2x2048xf32>
    %20 = vector.shape_cast %17 : vector<2x2048xf32> to vector<1x2x2048xf32>
    tpu.vector_store %arg3[%c0_8, %c2, %c0_9], %20 {strides = array<i32>} : memref<1x4x2048xf32, #tpu.memory_space<vmem>>, vector<1x2x2048xf32>,
    return
  }
  func.func @transform_0(%arg0: i32, %arg1: i32) -> (i32, i32, i32) {
    %c0_i32 = arith.constant 0 : i32
    %c0_i32_0 = arith.constant 0 : i32
    return %arg0, %c0_i32, %arg1 : i32, i32, i32
  }
  func.func @transform_1(%arg0: i32, %arg1: i32) -> (i32, i32, i32) {
    %c0_i32 = arith.constant 0 : i32
    %c0_i32_0 = arith.constant 0 : i32
    return %arg0, %c0_i32, %arg1 : i32, i32, i32
  }
  func.func @transform_2(%arg0: i32, %arg1: i32) -> (i32, i32, i32) {
    %c0_i32 = arith.constant 0 : i32
    %c0_i32_0 = arith.constant 0 : i32
    return %arg0, %c0_i32, %arg1 : i32, i32, i32
  }
}

</mosaic_0001>

<bundles_post_ra>
// kernel: tpu_custom_call.1
= control target key start
LH: loop header
LB: loop body
LE: loop exit
PB: predicated region body
PF: predicated region fallthrough
CT: control target
= control target key end

     0   :  { %8 = vsyncpa [#allocation3], 0  ;;  %s1745_s0 = inlined_call_operand.vmem [shape: f32[2,21,2048], index: 0, kind: input, shape index: {}]   ;;  %s1746_s1 = inlined_call_operand.hbm [shape: f32[2,4,2048], index: 1, kind: output, shape index: {0}]   ;;  %s1747_s2 = inlined_call_operand.hbm [shape: f32[2,16,2048], index: 2, kind: output, shape index: {1}]  }
   0x1   :  { %10 = vsyncpa [#allocation3 + $0x1], 0 }
   0x2   :  { %11 = vsyncpa [#allocation5], 0 }
   0x3   :  { %13 = vsyncpa [#allocation5 + $0x1], 0  ;;  %s1087_s9 = smov 0   ;;  %s1089_s10 = smov 0  }
   0x4   :  { %s1091_s11 = smov 0   ;;  %s1093_s12 = smov 0  }
   0x5   :  { %s1095_s13 = smov 0   ;;  %s1097_s14 = smov 0  }
   0x6 LB: > { %s875_s15 = sadd.s32 4294967295, %s1066_s14   ;;  %s876_s16 = sadd.s32 4294967294, %s1066_s14   ;;  %s1066_s14 = sphi %s1097_s14, %s19_s14   ;;  %s1062_s13 = sphi %s1095_s13, %s1804_s13   ;;  %s1058_s12 = sphi %s1093_s12, %s1803_s12   ;;  %s1054_s11 = sphi %s1091_s11, %s1802_s11   ;;  %s1050_s10 = sphi %s1089_s10, %s1801_s10   ;;  %s1046_s9 = sphi %s1087_s9, %s1800_s9  }
   0x7   : > { %s31_s17 = sadd.s32 1, %s1062_s13  ;;  %s68_s18 = sadd.s32 1, %s1054_s11 }
   0x8   : > { %p33_p0 = scmp.ge.s32.totalorder %s31_s17, 2  ;;  %p78_p1 = scmp.ne.s32.totalorder %s1054_s11, %s1050_s10 }
   0x9   : > { %p79_p2 = scmp.eq.s32.totalorder %s875_s15, 1  ;;  %p84_p3 = scmp.ne.s32.totalorder %s1050_s10, %s1046_s9 }
   0xa   : > { %s1806_s17 = smov (%p33_p0, %s31_s17), 0  ;;  %p85_p5 = scmp.eq.s32.totalorder %s876_s16, 1 }
   0xb   : > { %p1127_p4 = por %p79_p2, %p78_p1  ;;  %s63_s20 = ssub.s32 %s1062_s13, %s1806_s17 }
   0xc   : > { %p879_p6 = scmp.ge.s32.totalorder %s1066_s14, 1  ;;  %p66_p7 = scmp.eq.s32.totalorder %s63_s20, 0 }
   0xd   : > { %p1134_p8 = por %p85_p5, %p84_p3  ;;  %p144_p9 = scmp.lt.s32.totalorder %s1066_s14, 3 }
   0xe   : > { %s1140_s22 = scalar_select %p66_p7, %s1054_s11, %s68_s18  }
   0xf   : > { %p145_p10 = pnand %p879_p6, %p144_p9 }
  0x11   : > { %148 = sbr.rel (%p145_p10) target bundleno = 124 (0x7c), region = 24 }
  0x18   : > { %p176_p11 = scmp.lt.s32.totalorder %s1058_s12, 1  ;;  %v235_v0 = vlaneseq  ;;  %s1147_s25 = sand.u32 1, %s1050_s10   ;;  %vm395_vm0 = vcmask 1042432  }
  0x19   : > { %s881_s29 = sshll.u32 %s1147_s25, 8  ;;  %s892_s3 = sshll.u32 %s1058_s12, 12 }
  0x1a   : > { %v236_v1 = vshrl.u32 %v235_v0, 7  ;;  %s177_s23 = scalar_select %p176_p11, %s1058_s12, 1 }
  0x1b   : > { %s1244_s30 = scalar_lea.vmem [#allocation4], %s881_s29  ;;  %s880_s5 = sshll.u32 %s1147_s25, 6 }
  0x1c   : > { %s893_s24 = smul.u32 384, %s177_s23  ;;  %v1144_v2 = vsub.s32 4, %v236_v1  ;;  %s761_s4 = sshll.u32 %s1244_s30, 4  ;;  %s1548_s4 = int_to_ptr.vmem [resolvable:$true] %s761_s4 }
  0x1d   : > { %s1546_s8 = scalar_lea.hbm %s1747_s2, %s892_s3  ;;  %s730_s15 = scalar_lea.sflag [#allocation5], %s1147_s25 }
  0x1e   : > { %s1152_s28 = scalar_lea.vmem %s1745_s0, %s893_s24  ;;  %s956_s16 = scalar_lea.vmem %s1548_s4, 4096 }
  0x1f   : > { %v1155_v3 = vld [vmem:[%s1152_s28] sm:$0xff]  ;;  %v1159_v5 = vld [vmem:[%s1152_s28 + $0x8] sm:$0xff]  ;;  %v1171_v9 = vld [vmem:[%s1152_s28 + $0x10] sm:$0xff]  ;;  %p957_p12 = scmp.ne.s32.totalorder %s1548_s4, %s956_s16  ;;  %s1068_s18 = smov [#allocation4]  }
  0x20   : > { %v203_v4 = vld [vmem:[%s1152_s28 + $0x80] sm:$0xff]  ;;  %v1163_v6 = vrot.slane %v1155_v3, %v1144_v2  ;;  %v204_v7 = vld [vmem:[%s1152_s28 + $0x88] sm:$0xff]  ;;  %v1168_v8 = vrot.slane %v1159_v5, %v1144_v2  ;;  %v205_v10 = vld [vmem:[%s1152_s28 + $0x90] sm:$0xff]  ;;  %v1177_v11 = vrot.slane %v1171_v9, %v1144_v2  ;;  %v1180_v12 = vmul.f32 0.5, %v1155_v3  ;;  %s960_s20 = sshll.u32 %s1068_s18, 4  ;;  %s961_s20 = int_to_ptr.vmem [resolvable:$false] %s960_s20 }
  0x21   : > { %v1183_v13 = vmul.f32 0.5, %v1159_v5  ;;  %v1186_v14 = vmul.f32 0.5, %v1171_v9  ;;  %v1199_v19 = vld [vmem:[%s1152_s28 + $0x18] sm:$0xff]  ;;  %v1203_v21 = vld [vmem:[%s1152_s28 + $0x20] sm:$0xff]  ;;  %v1239_v39 = vld [vmem:[%s1152_s28 + $0x28] sm:$0xff]  ;;  %p958_p13 = pnand %p957_p12, %p1127_p4  ;;  %s962_s23 = scalar_lea.vmem %s961_s20, 8192 }
  0x22   : > { %v299_v15 = vmul.f32 %v1163_v6, %v1155_v3  ;;  %v1191_v16 = vmul.f32 %v1163_v6, %v203_v4  ;;  %v300_v17 = vmul.f32 %v1168_v8, %v1159_v5  ;;  %v1196_v18 = vmul.f32 %v1168_v8, %v204_v7  ;;  %v206_v20 = vld [vmem:[%s1152_s28 + $0x98] sm:$0xff]  ;;  %v207_v25 = vld [vmem:[%s1152_s28 + $0xa0] sm:$0xff]  ;;  %v208_v40 = vld [vmem:[%s1152_s28 + $0xa8] sm:$0xff]  ;;  %p963_p1 = scmp.lt.s32.totalorder %s1548_s4, %s961_s20  ;;  %p964_p2 = scmp.lt.s32.totalorder %s962_s23, %s956_s16 }
  0x23   : > { %v301_v22 = vmul.f32 %v1177_v11, %v1171_v9  ;;  %v1208_v23 = vmul.f32 %v1177_v11, %v205_v10  ;;  %v1212_v24 = vrot.slane %v1199_v19, %v1144_v2  ;;  %v1217_v26 = vrot.slane %v1203_v21, %v1144_v2  ;;  %v1257_v45 = vld [vmem:[%s1152_s28 + $0x30] sm:$0xff]  ;;  %v1261_v47 = vld [vmem:[%s1152_s28 + $0x38] sm:$0xff]  ;;  %v1275_v53 = vld [vmem:[%s1152_s28 + $0x40] sm:$0xff]  ;;  %p959_p0 = pneg %p958_p13 }
  0x24   : > { %v396_v27 = vrot.slane %v299_v15, 5  ;;  %v1759_v28 = vrot.slane %v1191_v16, 5  ;;  %v399_v29 = vrot.slane %v300_v17, 5  ;;  %v1757_v30 = vrot.slane %v1196_v18, 5  ;;  %v209_v46 = vld [vmem:[%s1152_s28 + $0xb0] sm:$0xff]  ;;  %v210_v51 = vld [vmem:[%s1152_s28 + $0xb8] sm:$0xff]  ;;  %p965_p3 = por %p964_p2, %p963_p1 }
  0x25   : > { %v402_v31 = vrot.slane %v301_v22, 5  ;;  %v1756_v32 = vrot.slane %v1208_v23, 5  ;;  %v302_v33 = vmul.f32 %v1212_v24, %v1199_v19  ;;  %v1225_v34 = vmul.f32 %v1212_v24, %v206_v20  ;;  %v211_v57 = vld [vmem:[%s1152_s28 + $0xc0] sm:$0xff]  ;;  %v1313_v20 = vld [vmem:[%s1152_s28 + $0x48] sm:$0xff] }
  0x26   : > { %v398_v35 = vsel %vm395_vm0, %v396_v27, %v1759_v28  ;;  %v401_v36 = vsel %vm395_vm0, %v399_v29, %v1757_v30  ;;  %v303_v37 = vmul.f32 %v1217_v26, %v1203_v21  ;;  %v1236_v38 = vmul.f32 %v1217_v26, %v207_v25  ;;  %v212_v22 = vld [vmem:[%s1152_s28 + $0xc8] sm:$0xff]  ;;  %v222_v28 = vld [vmem:[%s1152_s28 + $0x118] sm:$0x1f]  ;;  %p966_p5 = pnand %p965_p3, %p959_p0 }
  0x27   : > { %508 = vst [vmem:[%s1244_s30] sm:$0xff] %v398_v35  ;;  %509 = vst [vmem:[%s1244_s30 + $0x8] sm:$0xff] %v401_v36  ;;  %v404_v41 = vsel %vm395_vm0, %v402_v31, %v1756_v32  ;;  %v405_v42 = vrot.slane %v302_v33, 5  ;;  %v1754_v43 = vrot.slane %v1225_v34, 5  ;;  %v1254_v44 = vrot.slane %v1239_v39, %v1144_v2  ;;  %v1325_v33 = vld [vmem:[%s1152_s28 + $0x50] sm:$0xff]  ;;  %v1329_v36 = vld [vmem:[%s1152_s28 + $0x58] sm:$0xff] }
  0x28   : > { %510 = vst [vmem:[%s1244_s30 + $0x10] sm:$0xff] %v404_v41  ;;  %v408_v48 = vrot.slane %v303_v37, 5  ;;  %v1752_v49 = vrot.slane %v1236_v38, 5  ;;  %v1267_v50 = vrot.slane %v1257_v45, %v1144_v2  ;;  %v1272_v52 = vrot.slane %v1261_v47, %v1144_v2  ;;  %v213_v35 = vld [vmem:[%s1152_s28 + $0xd0] sm:$0xff]  ;;  %1774 = vst [vmem:[#allocation8_spill] sm:$0xff] %v1329_v36 }
  0x29   : > { %v407_v54 = vsel %vm395_vm0, %v405_v42, %v1754_v43  ;;  %v304_v55 = vmul.f32 %v1254_v44, %v1239_v39  ;;  %v1283_v56 = vmul.f32 %v1254_v44, %v208_v40  ;;  %v1288_v58 = vrot.slane %v1275_v53, %v1144_v2  ;;  %v214_v42 = vld [vmem:[%s1152_s28 + $0xd8] sm:$0xff]  ;;  %v220_v30 = vld [vmem:[%s1152_s28 + $0x108] sm:$0x1f] }
  0x2a   : > { %511 = vst [vmem:[%s1244_s30 + $0x18] sm:$0xff] %v407_v54  ;;  %v410_v59 = vsel %vm395_vm0, %v408_v48, %v1752_v49  ;;  %v305_v60 = vmul.f32 %v1267_v50, %v1257_v45  ;;  %v1297_v61 = vmul.f32 %v1267_v50, %v209_v46  ;;  %v306_v62 = vmul.f32 %v1272_v52, %v1261_v47  ;;  %v1346_v48 = vld [vmem:[%s1152_s28 + $0x60] sm:$0xff] }
  0x2b   : > { %512 = vst [vmem:[%s1244_s30 + $0x20] sm:$0xff] %v410_v59  ;;  %v411_v63 = vrot.slane %v304_v55, 5  ;;  %v1751_v0 = vrot.slane %v1283_v56, 5  ;;  %v1304_v1 = vmul.f32 %v1272_v52, %v210_v51  ;;  %v307_v4 = vmul.f32 %v1288_v58, %v1275_v53  ;;  %1775 = vst [vmem:[#allocation9_spill] sm:$0xff] %v1346_v48 }
  0x2c   : > { %v414_v7 = vrot.slane %v305_v60, 5  ;;  %v1750_v10 = vrot.slane %v1297_v61, 5  ;;  %v417_v15 = vrot.slane %v306_v62, 5  ;;  %v1310_v17 = vmul.f32 %v1288_v58, %v211_v57  ;;  %v215_v57 = vld [vmem:[%s1152_s28 + $0xe0] sm:$0xff] }
  0x2d   : > { %v413_v25 = vsel %vm395_vm0, %v411_v63, %v1751_v0  ;;  %v1749_v27 = vrot.slane %v1304_v1, 5  ;;  %v420_v29 = vrot.slane %v307_v4, 5  ;;  %v1322_v31 = vrot.slane %v1313_v20, %v1144_v2  ;;  %v1402_v0 = vld [vmem:[%s1152_s28 + $0x78] sm:$0xff] }
  0x2e   : > { %513 = vst [vmem:[%s1244_s30 + $0x28] sm:$0xff] %v413_v25  ;;  %v416_v37 = vsel %vm395_vm0, %v414_v7, %v1750_v10  ;;  %v1748_v40 = vrot.slane %v1310_v17, 5  ;;  %v1338_v41 = vrot.slane %v1325_v33, %v1144_v2  ;;  %v1343_v46 = vrot.slane %v1329_v36, %v1144_v2  ;;  %1778 = vst [vmem:[#allocation12_spill] sm:$0xff] %v1402_v0 }
  0x2f   : > { %514 = vst [vmem:[%s1244_s30 + $0x30] sm:$0xff] %v416_v37  ;;  %v419_v51 = vsel %vm395_vm0, %v417_v15, %v1749_v27  ;;  %v308_v54 = vmul.f32 %v1322_v31, %v1313_v20  ;;  %v1355_v55 = vmul.f32 %v1322_v31, %v212_v22  ;;  %v1360_v59 = vrot.slane %v1346_v48, %v1144_v2 }
  0x30   : > { %515 = vst [vmem:[%s1244_s30 + $0x38] sm:$0xff] %v419_v51  ;;  %v422_v60 = vsel %vm395_vm0, %v420_v29, %v1748_v40  ;;  %v309_v62 = vmul.f32 %v1338_v41, %v1325_v33  ;;  %v1369_v63 = vmul.f32 %v1338_v41, %v213_v35  ;;  %v310_v4 = vmul.f32 %v1343_v46, %v1329_v36  ;;  %v1381_v29 = vld [vmem:[%s1152_s28 + $0x68] sm:$0xff]  ;;  %v219_v40 = vld [vmem:[%s1152_s28 + $0x100] sm:$0x1f]  ;;  %v225_v36 = vld [vmem:[%s1152_s28 + $0x130] sm:$0x1f] }
  0x31   : > { %516 = vst [vmem:[%s1244_s30 + $0x40] sm:$0xff] %v422_v60  ;;  %v423_v7 = vrot.slane %v308_v54, 5  ;;  %v1753_v15 = vrot.slane %v1355_v55, 5  ;;  %v1376_v22 = vmul.f32 %v1343_v46, %v214_v42  ;;  %v311_v25 = vmul.f32 %v1360_v59, %v1346_v48  ;;  %1776 = vst [vmem:[#allocation10_spill] sm:$0xff] %v1381_v29  ;;  %v216_v60 = vld [vmem:[%s1152_s28 + $0xe8] sm:$0xff] }
  0x32   : > { %v426_v35 = vrot.slane %v309_v62, 5  ;;  %v1755_v37 = vrot.slane %v1369_v63, 5  ;;  %v429_v51 = vrot.slane %v310_v4, 5  ;;  %v1385_v54 = vmul.f32 %v1360_v59, %v215_v57  ;;  %v1398_v4 = vld [vmem:[%s1152_s28 + $0x70] sm:$0xff] }
  0x33   : > { %v425_v42 = vsel %vm395_vm0, %v423_v7, %v1753_v15  ;;  %v1758_v27 = vrot.slane %v1376_v22, 5  ;;  %v432_v10 = vrot.slane %v311_v25, 5  ;;  %v1395_v62 = vrot.slane %v1381_v29, %v1144_v2  ;;  %1777 = vst [vmem:[#allocation11_spill] sm:$0xff] %v1398_v4  ;;  %v217_v57 = vld [vmem:[%s1152_s28 + $0xf0] sm:$0xff]  ;;  %v218_v15 = vld [vmem:[%s1152_s28 + $0xf8] sm:$0xff] }
  0x34   : > { %517 = vst [vmem:[%s1244_s30 + $0x48] sm:$0xff] %v425_v42  ;;  %v428_v49 = vsel %vm395_vm0, %v426_v35, %v1755_v37  ;;  %v1762_v7 = vrot.slane %v1385_v54, 5  ;;  %v1411_v25 = vrot.slane %v1398_v4, %v1144_v2  ;;  %v1416_v43 = vrot.slane %v1402_v0, %v1144_v2 }
  0x35   : > { %518 = vst [vmem:[%s1244_s30 + $0x50] sm:$0xff] %v428_v49  ;;  %v431_v35 = vsel %vm395_vm0, %v429_v51, %v1758_v27  ;;  %v312_v42 = vmul.f32 %v1395_v62, %v1381_v29  ;;  %v1425_v37 = vmul.f32 %v1395_v62, %v216_v60  ;;  %v331_v32 = vmul.f32 %v1163_v6, %v219_v40  ;;  %v221_v27 = vld [vmem:[%s1152_s28 + $0x110] sm:$0x1f]  ;;  %v223_v29 = vld [vmem:[%s1152_s28 + $0x120] sm:$0x1f] }
  0x36   : > { %519 = vst [vmem:[%s1244_s30 + $0x58] sm:$0xff] %v431_v35  ;;  %v434_v2 = vsel %vm395_vm0, %v432_v10, %v1762_v7  ;;  %v313_v49 = vmul.f32 %v1411_v25, %v1398_v4  ;;  %v1436_v51 = vmul.f32 %v1411_v25, %v217_v57  ;;  %v314_v60 = vmul.f32 %v1416_v43, %v1402_v0  ;;  %v224_v7 = vld [vmem:[%s1152_s28 + $0x128] sm:$0x1f]  ;;  %v226_v4 = vld [vmem:[%s1152_s28 + $0x138] sm:$0x1f] }
  0x37   : > { %520 = vst [vmem:[%s1244_s30 + $0x60] sm:$0xff] %v434_v2  ;;  %v435_v6 = vrot.slane %v312_v42, 5  ;;  %v1771_v40 = vrot.slane %v1425_v37, 5  ;;  %v1446_v10 = vmul.f32 %v1416_v43, %v218_v15  ;;  %v444_v35 = vrot.slane %v331_v32, 5 }
  0x38   : > { %v438_v57 = vrot.slane %v313_v49, 5  ;;  %v441_v0 = vrot.slane %v314_v60, 5  ;;  %v332_v48 = vmul.f32 %v1168_v8, %v220_v30  ;;  %v1779_v15 = vrot.slane %v1191_v16, 5 }
  0x39   : > { %v437_v42 = vsel %vm395_vm0, %v435_v6, %v1771_v40  ;;  %v442_v2 = vrot.slane %v1446_v10, 5  ;;  %v333_v49 = vmul.f32 %v1177_v11, %v221_v27  ;;  %v1780_v60 = vrot.slane %v1436_v51, 5  ;;  %v227_v40 = vld [vmem:[%s1152_s28 + $0x140] sm:$0x1f] }
  0x3a   : > { %v445_v32 = vsel %vm395_vm0, %v1779_v15, %v444_v35  ;;  %521 = vst [vmem:[%s1244_s30 + $0x68] sm:$0xff] %v437_v42  ;;  %v446_v30 = vrot.slane %v332_v48, 5  ;;  %v334_v6 = vmul.f32 %v1212_v24, %v222_v28  ;;  %v335_v16 = vmul.f32 %v1217_v26, %v223_v29  ;;  %v228_v48 = vld [vmem:[%s1152_s28 + $0x148] sm:$0x1f]  ;;  %v229_v42 = vld [vmem:[%s1152_s28 + $0x150] sm:$0x1f] }
  0x3b   : > { %v440_v8 = vsel %vm395_vm0, %v438_v57, %v1780_v60  ;;  %524 = vst [vmem:[%s1244_s30 + $0x80] sm:$0xff] %v445_v32  ;;  %v443_v11 = vsel %vm395_vm0, %v441_v0, %v442_v2  ;;  %v448_v27 = vrot.slane %v333_v49, 5  ;;  %v336_v35 = vmul.f32 %v1254_v44, %v224_v7  ;;  %v230_v15 = vld [vmem:[%s1152_s28 + $0x158] sm:$0x1f]  ;;  %v231_v32 = vld [vmem:[%s1152_s28 + $0x160] sm:$0x1f] }
  0x3c   : > { %522 = vst [vmem:[%s1244_s30 + $0x70] sm:$0xff] %v440_v8  ;;  %v337_v57 = vmul.f32 %v1267_v50, %v225_v36  ;;  %523 = vst [vmem:[%s1244_s30 + $0x78] sm:$0xff] %v443_v11  ;;  %v1781_v24 = vrot.slane %v1196_v18, 5  ;;  %v450_v28 = vrot.slane %v334_v6, 5  ;;  %v452_v29 = vrot.slane %v335_v16, 5 }
  0x3d   : > { %v338_v0 = vmul.f32 %v1272_v52, %v226_v4  ;;  %v1782_v44 = vrot.slane %v1208_v23, 5  ;;  %v454_v36 = vrot.slane %v336_v35, 5  ;;  %v339_v18 = vmul.f32 %v1288_v58, %v227_v40  ;;  %v233_v58 = vld [vmem:[%s1152_s28 + $0x170] sm:$0x1f] }
  0x3e   : > { %v447_v26 = vsel %vm395_vm0, %v1781_v24, %v446_v30  ;;  %v456_v7 = vrot.slane %v337_v57, 5  ;;  %v1783_v52 = vrot.slane %v1225_v34, 5  ;;  %v1784_v49 = vrot.slane %v1236_v38, 5  ;;  %v232_v30 = vld [vmem:[%s1152_s28 + $0x168] sm:$0x1f] }
  0x3f   : > { %525 = vst [vmem:[%s1244_s30 + $0x88] sm:$0xff] %v447_v26  ;;  %v449_v50 = vsel %vm395_vm0, %v1782_v44, %v448_v27  ;;  %v458_v60 = vrot.slane %v338_v0, 5  ;;  %v340_v8 = vmul.f32 %v1322_v31, %v228_v48  ;;  %v1785_v40 = vrot.slane %v1283_v56, 5  ;;  %v234_v31 = vld [vmem:[%s1152_s28 + $0x178] sm:$0x1f] }
  0x40   : > { %526 = vst [vmem:[%s1244_s30 + $0x90] sm:$0xff] %v449_v50  ;;  %v451_v4 = vsel %vm395_vm0, %v1783_v52, %v450_v28  ;;  %v453_v23 = vsel %vm395_vm0, %v1784_v49, %v452_v29  ;;  %v1786_v34 = vrot.slane %v1297_v61, 5  ;;  %v460_v38 = vrot.slane %v339_v18, 5 }
  0x41   : > { %527 = vst [vmem:[%s1244_s30 + $0x98] sm:$0xff] %v451_v4  ;;  %528 = vst [vmem:[%s1244_s30 + $0xa0] sm:$0xff] %v453_v23  ;;  %v455_v6 = vsel %vm395_vm0, %v1785_v40, %v454_v36  ;;  %v341_v11 = vmul.f32 %v1338_v41, %v229_v42  ;;  %v1787_v27 = vrot.slane %v1304_v1, 5  ;;  %v462_v56 = vrot.slane %v340_v8, 5 }
  0x42   : > { %v457_v16 = vsel %vm395_vm0, %v1786_v34, %v456_v7  ;;  %529 = vst [vmem:[%s1244_s30 + $0xa8] sm:$0xff] %v455_v6  ;;  %v342_v57 = vmul.f32 %v1343_v46, %v230_v15  ;;  %v343_v61 = vmul.f32 %v1360_v59, %v231_v32  ;;  %v1788_v48 = vrot.slane %v1310_v17, 5 }
  0x43   : > { %530 = vst [vmem:[%s1244_s30 + $0xb0] sm:$0xff] %v457_v16  ;;  %v459_v35 = vsel %vm395_vm0, %v1787_v27, %v458_v60  ;;  %v464_v41 = vrot.slane %v341_v11, 5  ;;  %v344_v26 = vmul.f32 %v1395_v62, %v232_v30  ;;  %v345_v1 = vmul.f32 %v1411_v25, %v233_v58 }
  0x44   : > { %531 = vst [vmem:[%s1244_s30 + $0xb8] sm:$0xff] %v459_v35  ;;  %v461_v24 = vsel %vm395_vm0, %v1788_v48, %v460_v38  ;;  %v1789_v28 = vrot.slane %v1355_v55, 5  ;;  %v466_v59 = vrot.slane %v342_v57, 5  ;;  %v468_v29 = vrot.slane %v343_v61, 5 }
  0x45   : > { %532 = vst [vmem:[%s1244_s30 + $0xc0] sm:$0xff] %v461_v24  ;;  %v346_v17 = vmul.f32 %v1416_v43, %v234_v31  ;;  %v1790_v0 = vrot.slane %v1369_v63, 5  ;;  %v470_v42 = vrot.slane %v344_v26, 5  ;;  %v472_v25 = vrot.slane %v345_v1, 5 }
  0x46   : > { %v463_v46 = vsel %vm395_vm0, %v1789_v28, %v462_v56  ;;  %v572_v55 = vrot.slane %v1180_v12, 2  ;;  %v1791_v44 = vrot.slane %v1376_v22, 5  ;;  %v1792_v36 = vrot.slane %v1385_v54, 5 }
  0x47   : > { %533 = vst [vmem:[%s1244_s30 + $0xc8] sm:$0xff] %v463_v46  ;;  %v465_v62 = vsel %vm395_vm0, %v1790_v0, %v464_v41  ;;  %v474_v7 = vrot.slane %v346_v17, 5  ;;  %v573_v63 = vrot.slane %v1183_v13, 2  ;;  %v1793_v22 = vrot.slane %v1425_v37, 5 }
  0x48   : > { %534 = vst [vmem:[%s1244_s30 + $0xd0] sm:$0xff] %v465_v62  ;;  %v467_v50 = vsel %vm395_vm0, %v1791_v44, %v466_v59  ;;  %v469_v43 = vsel %vm395_vm0, %v1792_v36, %v468_v29  ;;  %v1794_v54 = vrot.slane %v1436_v51, 5  ;;  %v604_v32 = vsub.f32 %v1155_v3, %v572_v55 }
  0x49   : > { %535 = vst [vmem:[%s1244_s30 + $0xd8] sm:$0xff] %v467_v50  ;;  %536 = vst [vmem:[%s1244_s30 + $0xe0] sm:$0xff] %v469_v43  ;;  %v471_v18 = vsel %vm395_vm0, %v1793_v22, %v470_v42  ;;  %v1562_v52 = vmul.f32 0.5, %v1199_v19  ;;  %v475_v37 = vsel %vm395_vm0, %v442_v2, %v474_v7  ;;  %v605_v51 = vsub.f32 %v1159_v5, %v573_v63 }
  0x4a   : > { %v473_v15 = vsel %vm395_vm0, %v1794_v54, %v472_v25  ;;  %537 = vst [vmem:[%s1244_s30 + $0xe8] sm:$0xff] %v471_v18  ;;  %v574_v4 = vrot.slane %v1186_v14, 2  ;;  %v1574_v49 = vmul.f32 0.5, %v1203_v21  ;;  %539 = vst [vmem:[%s1244_s30 + $0xf8] sm:$0xff] %v475_v37  ;;  %v1579_v60 = vmul.f32 0.5, %v1239_v39 }
  0x4b   : > { %538 = vst [vmem:[%s1244_s30 + $0xf0] sm:$0xff] %v473_v15  ;;  %v575_v23 = vrot.slane %v1562_v52, 2  ;;  %v1582_v10 = vmul.f32 0.5, %v1257_v45  ;;  %v1585_v2 = vmul.f32 0.5, %v1261_v47  ;;  %v636_v8 = vcombine.low %v604_v32, %v605_v51 }
  0x4c   : > { %v606_v30 = vsub.f32 %v1171_v9, %v574_v4  ;;  %v576_v58 = vrot.slane %v1574_v49, 2  ;;  %v1592_v40 = vmul.f32 0.5, %v1275_v53 }
  0x4d   : > { %969 = shalt.err (!%p966_p5)
}
  0x4e   : > { %s970_s24 = scalar_lea.hbm %s1546_s8, 4096  ;;  %s974_s28 = scalar_lea.hbm %s1747_s2, 8192 }
  0x4f   : > { %p971_p6 = scmp.ne.s32.totalorder %s1546_s8, %s970_s24  ;;  %p975_p10 = scmp.lt.u32.totalorder %s1546_s8, %s1747_s2 }
  0x50   : > { %p976_p11 = scmp.lt.u32.totalorder %s974_s28, %s970_s24  ;;  %p978_p13 = scmp.lt.u32.totalorder %s970_s24, %s1546_s8 }
  0x51   : > { %p972_p7 = pnand %p971_p6, %p1127_p4 }
  0x52   : > { %p977_p12 = por %p976_p11, %p975_p10 }
  0x53   : > { %p973_p9 = pneg %p972_p7 }
  0x54   : > { %p979_p0 = por %p978_p13, %p977_p12 }
  0x56   : > { %p980_p1 = pnand %p979_p0, %p973_p9 }
  0x58   : > { %983 = shalt.err (!%p980_p1)
}
  0x59   : > { %s1069_s3 = smov 2048   ;;  %s1070_s6 = smov 128   ;;  %v607_v6 = vsub.f32 %v1199_v19, %v575_v23  ;;  %v577_v34 = vrot.slane %v1579_v60, 2  ;;  %v578_v16 = vrot.slane %v1582_v10, 2  ;;  %v579_v38 = vrot.slane %v1585_v2, 2  ;;  %v1795_v26 = vld [vmem:[#allocation8_spill] sm:$0xff] }
  0x5a   : > { %895 = dma.vmem_to_hbm [thread:$0]  (%p1127_p4), %s1548_s4, 4096, %s1546_s8, %s730_s15, %s1069_s3, %s1069_s3, %s1070_s6   ;;  %v608_v11 = vsub.f32 %v1203_v21, %v576_v58  ;;  %v549_v31 = vmul.f32 0.5, %v1313_v20  ;;  %v580_v27 = vrot.slane %v1592_v40, 2  ;;  %v550_v35 = vmul.f32 0.5, %v1325_v33  ;;  %v1796_v29 = vld [vmem:[#allocation9_spill] sm:$0xff]  ;;  %v1797_v0 = vld [vmem:[#allocation10_spill] sm:$0xff] }
  0x5b   : > { %s1626_s7 = scalar_lea.vmem [#allocation2], %s880_s5  ;;  %v637_v56 = vcombine.low %v606_v30, %v607_v6  ;;  %v609_v57 = vsub.f32 %v1239_v39, %v577_v34  ;;  %v610_v61 = vsub.f32 %v1257_v45, %v578_v16  ;;  %v611_v48 = vsub.f32 %v1261_v47, %v579_v38  ;;  %v1798_v50 = vld [vmem:[#allocation11_spill] sm:$0xff]  ;;  %v1799_v22 = vld [vmem:[#allocation12_spill] sm:$0xff]  ;;  %s891_s4 = sshll.u32 %s1058_s12, 10 }
  0x5c   : > { %652 = vst [vmem:[%s1626_s7] sm:$0x33] %v636_v8  ;;  %v581_v24 = vrot.slane %v549_v31, 2  ;;  %v612_v41 = vsub.f32 %v1275_v53, %v580_v27  ;;  %v551_v1 = vmul.f32 0.5, %v1795_v26  ;;  %v582_v28 = vrot.slane %v550_v35, 2  ;;  %s746_s5 = sshll.u32 %s1626_s7, 4  ;;  %s1695_s16 = scalar_lea.hbm %s1746_s1, %s891_s4  ;;  %s1697_s5 = int_to_ptr.vmem [resolvable:$true] %s746_s5 }
  0x5d   : > { %653 = vst [vmem:[%s1626_s7 + $0x8] sm:$0x33] %v637_v56  ;;  %v638_v46 = vcombine.low %v608_v11, %v609_v57  ;;  %v639_v59 = vcombine.low %v610_v61, %v611_v48  ;;  %v552_v17 = vmul.f32 0.5, %v1796_v29  ;;  %v553_v62 = vmul.f32 0.5, %v1797_v0  ;;  %s725_s12 = scalar_lea.sflag [#allocation3], %s1147_s25  ;;  %s984_s18 = scalar_lea.vmem %s1697_s5, 1024 }
  0x5e   : > { %v613_v42 = vsub.f32 %v1313_v20, %v581_v24  ;;  %v583_v25 = vrot.slane %v551_v1, 2  ;;  %v614_v44 = vsub.f32 %v1325_v33, %v582_v28  ;;  %v554_v36 = vmul.f32 0.5, %v1798_v50  ;;  %p985_p2 = scmp.ne.s32.totalorder %s1697_s5, %s984_s18  ;;  %s1071_s20 = smov [#allocation2]  }
  0x5f   : > { %654 = vst [vmem:[%s1626_s7 + $0x10] sm:$0x33] %v638_v46  ;;  %655 = vst [vmem:[%s1626_s7 + $0x18] sm:$0x33] %v639_v59  ;;  %v584_v43 = vrot.slane %v552_v17, 2  ;;  %v585_v7 = vrot.slane %v553_v62, 2  ;;  %v660_v54 = vadd.f32 %v572_v55, %v1155_v3  ;;  %v661_v51 = vadd.f32 %v573_v63, %v1159_v5 }
  0x60   : > { %v555_v18 = vmul.f32 0.5, %v1799_v22  ;;  %v640_v15 = vcombine.low %v612_v41, %v613_v42  ;;  %v615_v32 = vsub.f32 %v1795_v26, %v583_v25  ;;  %v586_v37 = vrot.slane %v554_v36, 2  ;;  %p986_p3 = pnand %p985_p2, %p1127_p4  ;;  %s988_s23 = sshll.u32 %s1071_s20, 4  ;;  %s989_s23 = int_to_ptr.vmem [resolvable:$false] %s988_s23 }
  0x61   : > { %v616_v60 = vsub.f32 %v1796_v29, %v584_v43  ;;  %v617_v10 = vsub.f32 %v1797_v0, %v585_v7  ;;  %v662_v12 = vadd.f32 %v574_v4, %v1171_v9  ;;  %v692_v8 = vcombine.low %v660_v54, %v661_v51  ;;  %s990_s24 = scalar_lea.vmem %s989_s23, 2048  ;;  %p991_p6 = scmp.lt.s32.totalorder %s1697_s5, %s989_s23 }
  0x62   : > { %v587_v2 = vrot.slane %v555_v18, 2  ;;  %656 = vst [vmem:[%s1626_s7 + $0x20] sm:$0x33] %v640_v15  ;;  %v641_v3 = vcombine.low %v614_v44, %v615_v32  ;;  %v618_v55 = vsub.f32 %v1798_v50, %v586_v37  ;;  %v663_v5 = vadd.f32 %v575_v23, %v1199_v19  ;;  %p987_p5 = pneg %p986_p3  ;;  %p992_p7 = scmp.lt.s32.totalorder %s990_s24, %s984_s18 }
  0x63   : > { %v642_v13 = vcombine.low %v616_v60, %v617_v10  ;;  %v664_v30 = vadd.f32 %v576_v58, %v1203_v21  ;;  %v665_v14 = vadd.f32 %v577_v34, %v1239_v39  ;;  %v700_v9 = vrot.slane %v692_v8, 6 }
  0x64   : > { %v619_v63 = vsub.f32 %v1799_v22, %v587_v2  ;;  %657 = vst [vmem:[%s1626_s7 + $0x28] sm:$0x33] %v641_v3  ;;  %v693_v4 = vcombine.low %v662_v12, %v663_v5  ;;  %v666_v40 = vadd.f32 %v578_v16, %v1257_v45  ;;  %v667_v6 = vadd.f32 %v579_v38, %v1261_v47  ;;  %p993_p9 = por %p992_p7, %p991_p6 }
  0x65   : > { %658 = vst [vmem:[%s1626_s7 + $0x30] sm:$0x33] %v642_v13  ;;  %v694_v52 = vcombine.low %v664_v30, %v665_v14  ;;  %v668_v23 = vadd.f32 %v580_v27, %v1275_v53  ;;  %v669_v11 = vadd.f32 %v581_v24, %v1313_v20  ;;  %716 = vst [vmem:[%s1626_s7] sm:$0xcc] %v700_v9 }
  0x66   : > { %v643_v19 = vcombine.low %v618_v55, %v619_v63  ;;  %v701_v21 = vrot.slane %v693_v4, 6  ;;  %v695_v39 = vcombine.low %v666_v40, %v667_v6  ;;  %v670_v49 = vadd.f32 %v582_v28, %v1325_v33  ;;  %p994_p10 = pnand %p993_p9, %p987_p5 }
  0x67   : > { %v671_v45 = vadd.f32 %v583_v25, %v1795_v26  ;;  %v702_v47 = vrot.slane %v694_v52, 6  ;;  %v696_v58 = vcombine.low %v668_v23, %v669_v11  ;;  %v672_v34 = vadd.f32 %v584_v43, %v1796_v29 }
  0x68   : > { %659 = vst [vmem:[%s1626_s7 + $0x38] sm:$0x33] %v643_v19  ;;  %v673_v53 = vadd.f32 %v585_v7, %v1797_v0  ;;  %717 = vst [vmem:[%s1626_s7 + $0x8] sm:$0xcc] %v701_v21  ;;  %v703_v20 = vrot.slane %v695_v39, 6  ;;  %v674_v38 = vadd.f32 %v586_v37, %v1798_v50  ;;  %v675_v33 = vadd.f32 %v587_v2, %v1799_v22 }
  0x69   : > { %v697_v16 = vcombine.low %v670_v49, %v671_v45  ;;  %718 = vst [vmem:[%s1626_s7 + $0x10] sm:$0xcc] %v702_v47  ;;  %v704_v31 = vrot.slane %v696_v58, 6 }
  0x6a   : > { %v698_v27 = vcombine.low %v672_v34, %v673_v53  ;;  %719 = vst [vmem:[%s1626_s7 + $0x18] sm:$0xcc] %v703_v20  ;;  %v699_v56 = vcombine.low %v674_v38, %v675_v33 }
  0x6b   : > { %v705_v35 = vrot.slane %v697_v16, 6  ;;  %720 = vst [vmem:[%s1626_s7 + $0x20] sm:$0xcc] %v704_v31 }
  0x6c   : > { %v706_v57 = vrot.slane %v698_v27, 6  ;;  %v707_v61 = vrot.slane %v699_v56, 6 }
  0x6d   : > { %721 = vst [vmem:[%s1626_s7 + $0x28] sm:$0xcc] %v705_v35 }
  0x6e   : > { %722 = vst [vmem:[%s1626_s7 + $0x30] sm:$0xcc] %v706_v57  ;;  %723 = vst [vmem:[%s1626_s7 + $0x38] sm:$0xcc] %v707_v61 }
  0x6f   : > { %997 = shalt.err (!%p994_p10)
}
  0x70   : > { %s998_s25 = scalar_lea.hbm %s1695_s16, 1024  ;;  %s1002_s28 = scalar_lea.hbm %s1746_s1, 2048 }
  0x71   : > { %p999_p11 = scmp.ne.s32.totalorder %s1695_s16, %s998_s25  ;;  %p1003_p0 = scmp.lt.u32.totalorder %s1695_s16, %s1746_s1 }
  0x72   : > { %p1004_p1 = scmp.lt.u32.totalorder %s1002_s28, %s998_s25  ;;  %p1006_p3 = scmp.lt.u32.totalorder %s998_s25, %s1695_s16 }
  0x73   : > { %p1000_p12 = pnand %p999_p11, %p1127_p4 }
  0x74   : > { %p1005_p2 = por %p1004_p1, %p1003_p0 }
  0x75   : > { %p1001_p13 = pneg %p1000_p12 }
  0x76   : > { %p1007_p5 = por %p1006_p3, %p1005_p2 }
  0x78   : > { %p1008_p6 = pnand %p1007_p5, %p1001_p13 }
  0x7a   : > { %1011 = shalt.err (!%p1008_p6)
}
  0x7b   : > { %894 = dma.vmem_to_hbm [thread:$0]  (%p1127_p4), %s1697_s5, 1024, %s1695_s16, %s725_s12  }
  0x7c PF: > { %p905_p7 = scmp.ge.s32.totalorder %s1066_s14, 2  ;;  %s776_s3 = sand.u32 1, %s1046_s9  }
  0x7d   : > { %s777_s6 = scalar_lea.sflag [#allocation3], %s776_s3 }
  0x7e   : > { %p899_p9 = pnand %p905_p7, %p1134_p8 }
  0x80   : > { %1037 = dma.done.wait (!%p899_p9), %s777_s6, 1024  }
  0x81   : > { %1039 = vsyncadd (!%p899_p9), %s777_s6, 4294966272  ;;  %s786_s7 = scalar_lea.sflag [#allocation5], %s776_s3 }
  0x82   : > { %1041 = dma.done.wait (!%p899_p9), %s786_s7, 4096  }
  0x83   : > { %1043 = vsyncadd (!%p899_p9), %s786_s7, 4294963200  ;;  %s19_s14 = sadd.s32 1, %s1066_s14   ;;  %s1800_s9 = smov %s1050_s10 }
  0x84   : > { %p16_p10 = scmp.ge.s32.totalorder %s19_s14, 4   ;;  %s1801_s10 = smov %s1054_s11 }
  0x85   : > { %s1802_s11 = smov %s1140_s22  ;;  %s1803_s12 = smov %s1062_s13 }
  0x86   : > { %s1804_s13 = smov %s1806_s17  ;;  %18 = sbr.rel (!%p16_p10) target bundleno = 6 (0x6), region = 76 }
  0x8d   :  { %791 = vsyncpa [#allocation3], 1 }
  0x8e   :  { %793 = vsyncpa [#allocation3 + $0x1], 1 }
  0x8f   :  { %794 = vsyncpa [#allocation5], 1 }
  0x90   :  { %796 = vsyncpa [#allocation5 + $0x1], 1 }

</bundles_post_ra>
